<compile_context>
chip_gen: v5e
topology: v5e:2x2
jax: 0.10.0
libtpu: 0.0.40
codegen_flags: <defaults>
</compile_context>

<pallas_src>
import functools

import jax
import jax.numpy as jnp
from jax.experimental import pallas as pl
from jax.experimental.pallas import tpu as pltpu

_LANE = 128   # lane width (last-dim padding target)
_SUB = 8      # sublane width (second-to-last-dim padding target)

# Cached: does the installed Pallas accept pipeline_mode=pl.Buffered(1)?
_SINGLE_BUFFER_WEIGHTS_OK = None


def _round_up(x, m):
    return (x + m - 1) // m * m


@functools.lru_cache(maxsize=1)
def _tpu_info():
    """(vmem_capacity_bytes, has_bf16_vpu) for the local TPU, with safe fallbacks."""
    vmem_cap = 64 << 20            # conservative default (v7x per-core VMEM)
    try:
        cap = getattr(pltpu.get_tpu_info(), "vmem_capacity_bytes", None)
        if cap:
            vmem_cap = int(cap)
    except Exception:
        pass
    has_bf16_vpu = False           # conservative default: f32 epilogue everywhere
    try:
        kind = jax.devices()[0].device_kind.lower()
        # v2-v5 have no bf16 VPU/EUP; v6e/v7x do.
        has_bf16_vpu = not any(t in kind for t in ("v2", "v3", "v4", "v5"))
    except Exception:
        pass
    return vmem_cap, has_bf16_vpu


def _make_kernel(bf16_epilogue):
    def kernel(x_ref, w1_ref, b1_ref, w2_ref, b2_ref, out_ref):
        f32 = jnp.float32
        # dense: x @ W1, native-dtype MXU operands, f32 accumulation.
        h = jnp.dot(x_ref[...], w1_ref[...], preferred_element_type=f32)
        if bf16_epilogue:
            # v6e/v7x bf16 VPU/EUP: one downcast, bf16 bias-add + tanh; feeds
            # dot2's bf16 MXU path directly (no separate f32->bf16 cast).
            h = jnp.tanh(h.astype(jnp.bfloat16) + b1_ref[...].astype(jnp.bfloat16))
        else:
            # f32 epilogue: exact path for f32 weights, and the fast/safe path
            # on v5e (no bf16 VPU/EUP).
            h = jnp.tanh(h + b1_ref[...].astype(f32))
        if h.dtype != w2_ref.dtype:
            h = h.astype(w2_ref.dtype)
        # out_proj: h @ W2, f32 accumulation + f32 bias add.
        o = jnp.dot(h, w2_ref[...], preferred_element_type=f32)
        o = o + b2_ref[...].astype(f32)
        out_ref[...] = o.astype(out_ref.dtype)
    return kernel


def prepare_bart_head_params(w1, b1, w2, b2, *, dtype=None):
    """One-time prep of PyTorch-layout Linear params for the Pallas kernel.

    w1: [inner_dim, input_dim], b1: [inner_dim]
    w2: [num_classes, inner_dim], b2: [num_classes]
    dtype: optional cast of the matmul operands (e.g. bf16 on v5e for ~2-3x MXU
           throughput when the caller's weights are f32).

    Transposes to [in, out] (kernel does plain x @ W on the MXU, no in-kernel
    relayout) and zero-pads every matmul dim to a multiple of 128 (mathematical
    no-op: padded x columns hit zero weight rows, padded hidden columns are
    tanh(0+0)=0 and hit zero W2 rows, padded class columns are sliced off).
    Call this once at parameter-load time and reuse the result per forward call.
    """
    d_inner, d_in = w1.shape
    n_cls = w2.shape[0]
    assert b1.shape == (d_inner,)
    assert w2.shape == (n_cls, d_inner)
    assert b2.shape == (n_cls,)
    if dtype is not None:
        w1, b1, w2, b2 = (a.astype(dtype) for a in (w1, b1, w2, b2))

    d_in_p = _round_up(d_in, _LANE)
    d_h_p = _round_up(d_inner, _LANE)
    c_p = _round_up(n_cls, _LANE)

    def _pad2(a, rows, cols):
        if a.shape == (rows, cols):
            return a
        return jnp.zeros((rows, cols), a.dtype).at[:a.shape[0], :a.shape[1]].set(a)

    return {
        "w1": _pad2(w1.T, d_in_p, d_h_p),
        "b1": _pad2(b1.reshape(1, -1), 1, d_h_p),
        "w2": _pad2(w2.T, d_h_p, c_p),
        "b2": _pad2(b2.reshape(1, -1), 1, c_p),
        "d_in": d_in, "d_inner": d_inner, "n_cls": n_cls,
    }


def bart_classification_head(features, params, *, block_rows=512, input_dtype=None):
    """BART classification head forward: tanh(x @ W1 + b1) @ W2 + b2.

    features: [B, input_dim]; params: output of prepare_bart_head_params.
    input_dtype: optional operand cast (e.g. bf16 on v5e); accumulation stays f32.
    Returns logits [B, num_classes] in features.dtype.
    """
    out_dtype = features.dtype
    x = features if input_dtype is None else features.astype(input_dtype)
    B, d_in = x.shape
    assert d_in == params["d_in"], "feature dim mismatch with prepared params"

    w1_p, b1_p, w2_p, b2_p = params["w1"], params["b1"], params["w2"], params["b2"]
    n_cls = params["n_cls"]
    d_in_p, d_h_p = w1_p.shape
    c_p = w2_p.shape[1]

    x_dt, w_dt = x.dtype, w1_p.dtype
    x_item = jnp.dtype(x_dt).itemsize
    w_item = jnp.dtype(w_dt).itemsize
    out_item = jnp.dtype(out_dtype).itemsize

    vmem_cap, has_bf16_vpu = _tpu_info()
    bf16_epilogue = bool(has_bf16_vpu and w_dt == jnp.bfloat16)
    epi_item = 2 if bf16_epilogue else 4

    # ---- batch tile size ---------------------------------------------------
    tb = _round_up(min(block_rows, max(B, 1)), _SUB)
    # Keep >=2 grid steps when the batch allows it, so both v7x TensorCores
    # (grid axis marked "parallel") get work; harmless on 1-TC chips.
    tb = min(tb, _round_up((B + 1) // 2, _SUB))
    tb = max(tb, _SUB)

    # VMEM budget: double-buffered x/out tiles + (conservatively 2x) resident
    # weights + in-kernel f32 accumulators and the recast hidden fed to dot2.
    # Budget and max tile derived from the chip's real VMEM capacity.
    usable = max(32 << 20, min(int(vmem_cap * 7 // 8), vmem_cap - (4 << 20)))
    weight_bytes = 2 * ((d_in_p * d_h_p + d_h_p * c_p) * w_item
                        + (d_h_p + c_p) * w_item)
    per_row_bytes = (2 * d_in_p * x_item      # pipelined x tile
                     + 2 * c_p * out_item     # pipelined out tile
                     + d_h_p * 4              # f32 accumulator of dot1
                     + d_h_p * epi_item       # tanh / recast hidden for dot2
                     + c_p * 4)               # f32 accumulator of dot2
    slack = 2 << 20
    tb_max = (usable - weight_bytes - slack) // max(per_row_bytes, 1)
    tb_max = max(_SUB, (tb_max // _SUB) * _SUB)
    tb = min(tb, tb_max)

    b_p = _round_up(B, tb)
    grid = (b_p // tb,)

    vmem_bytes = int(weight_bytes + tb * per_row_bytes + 2 * slack)
    vmem_bytes = max(16 << 20, min(vmem_bytes, usable))

    # ---- activation padding (skipped when already aligned: no extra HBM copy)
    if (b_p, d_in_p) != (B, d_in):
        x_p = jnp.zeros((b_p, d_in_p), x_dt).at[:B, :d_in].set(x)
    else:
        x_p = x

    kernel = _make_kernel(bf16_epilogue)

    def _w_spec(shape, single_buffer):
        # Resident weights/biases: constant block index, never re-DMA'd.
        # Single-buffer them to halve their VMEM footprint.
        if single_buffer:
            return pl.BlockSpec(shape, lambda i: (0, 0), pipeline_mode=pl.Buffered(1))
        return pl.BlockSpec(shape, lambda i: (0, 0))

    def _run(single_buffer):
        return pl.pallas_call(
            kernel,
            out_shape=jax.ShapeDtypeStruct((b_p, c_p), out_dtype),
            grid_spec=pltpu.PrefetchScalarGridSpec(
                num_scalar_prefetch=0,
                grid=grid,
                in_specs=[
                    pl.BlockSpec((tb, d_in_p), lambda i: (i, 0)),   # x: batch-tiled
                    _w_spec((d_in_p, d_h_p), single_buffer),        # W1 resident
                    _w_spec((1, d_h_p), single_buffer),             # b1 resident
                    _w_spec((d_h_p, c_p), single_buffer),           # W2 resident
                    _w_spec((1, c_p), single_buffer),               # b2 resident
                ],
                out_specs=pl.BlockSpec((tb, c_p), lambda i: (i, 0)),  # lane-dense out
            ),
            compiler_params=pltpu.CompilerParams(
                dimension_semantics=("parallel",),   # megacore / v7x 2-TC sharding
                vmem_limit_bytes=vmem_bytes,
            ),
        )(x_p, w1_p, b1_p, w2_p, b2_p)

    global _SINGLE_BUFFER_WEIGHTS_OK
    if _SINGLE_BUFFER_WEIGHTS_OK is None:
        try:
            out_p = _run(True)
            _SINGLE_BUFFER_WEIGHTS_OK = True
        except Exception:
            _SINGLE_BUFFER_WEIGHTS_OK = False
            out_p = _run(False)
    else:
        out_p = _run(_SINGLE_BUFFER_WEIGHTS_OK)

    # ---- un-pad (skipped when already aligned) ------------------------------
    if (b_p, c_p) != (B, n_cls):
        out_p = out_p[:B, :n_cls]
    return out_p


def bart_classification_head_torch_layout(features, w1, b1, w2, b2, **kw):
    """Convenience path taking PyTorch-layout weights directly.

    Prefer prepare_bart_head_params() once at load time + bart_classification_head().
    """
    return bart_classification_head(
        features, prepare_bart_head_params(w1, b1, w2, b2), **kw)


def _reference(features, w1, b1, w2, b2):
    f32 = jnp.float32
    h = jnp.tanh(features.astype(f32) @ w1.astype(f32).T + b1.astype(f32))
    return h @ w2.astype(f32).T + b2.astype(f32)


if __name__ == "__main__":
    key = jax.random.PRNGKey(0)
    k_x, k_w1, k_b1, k_w2, k_b2, k_big = jax.random.split(key, 6)

    # --- small shapes consistent with the module (pooled features -> logits) ---
    batch, input_dim, inner_dim, num_classes = 8, 32, 32, 8
    # PyTorch Linear weight layout: [out_features, in_features].
    features = jax.random.normal(k_x, (batch, input_dim), dtype=jnp.float32)
    w1 = jax.random.normal(k_w1, (inner_dim, input_dim), dtype=jnp.float32) * 0.1
    b1 = jax.random.normal(k_b1, (inner_dim,), dtype=jnp.float32) * 0.1
    w2 = jax.random.normal(k_w2, (num_classes, inner_dim), dtype=jnp.float32) * 0.1
    b2 = jax.random.normal(k_b2, (num_classes,), dtype=jnp.float32) * 0.1
    ref = _reference(features, w1, b1, w2, b2)

    # f32 path: tight check. Params prepared once, reused across calls.
    params_f32 = prepare_bart_head_params(w1, b1, w2, b2)
    out = jax.block_until_ready(bart_classification_head(features, params_f32))
    assert out.shape == (batch, num_classes)
    assert jnp.allclose(out.astype(jnp.float32), ref, atol=1e-5, rtol=1e-5), \
        "f32 mismatch vs reference"

    # bf16 path: bf16 MXU operands (+ bf16 epilogue on v6e/v7x), f32 accumulation.
    bf = jnp.bfloat16
    params_bf16 = prepare_bart_head_params(w1, b1, w2, b2, dtype=bf)
    out_bf = jax.block_until_ready(
        bart_classification_head(features.astype(bf), params_bf16))
    assert out_bf.shape == (batch, num_classes)
    assert jnp.allclose(out_bf.astype(jnp.float32), ref, atol=5e-2, rtol=5e-2), \
        "bf16 mismatch vs reference"

    # Larger, unaligned batch: exercises the multi-step grid (>=2 steps for the
    # v7x 2-TC path), batch-row padding, and the lane-padded class dim.
    B2, D2, H2, C2 = 300, 256, 256, 10
    kk = jax.random.split(k_big, 5)
    f2 = jax.random.normal(kk[0], (B2, D2), dtype=jnp.float32)
    w1b = jax.random.normal(kk[1], (H2, D2), dtype=jnp.float32) * 0.05
    b1b = jax.random.normal(kk[2], (H2,), dtype=jnp.float32) * 0.05
    w2b = jax.random.normal(kk[3], (C2, H2), dtype=jnp.float32) * 0.05
    b2b = jax.random.normal(kk[4], (C2,), dtype=jnp.float32) * 0.05
    ref2 = _reference(f2, w1b, b1b, w2b, b2b)
    params2 = prepare_bart_head_params(w1b, b1b, w2b, b2b, dtype=bf)
    out2 = jax.block_until_ready(
        bart_classification_head(f2.astype(bf), params2))
    assert out2.shape == (B2, C2)
    assert jnp.allclose(out2.astype(jnp.float32), ref2, atol=1e-1, rtol=1e-1), \
        "bf16 large-batch mismatch vs reference"

    print("KERNEL_OK")
</pallas_src>

<mosaic_0001>
module attributes {stable_mosaic.version = 11 : i64} {
  func.func @kernel(%arg0: i32, %arg1: memref<8x128xf32, #tpu.memory_space<vmem>>, %arg2: memref<128x128xf32, #tpu.memory_space<vmem>>, %arg3: memref<1x128xf32, #tpu.memory_space<vmem>>, %arg4: memref<128x128xf32, #tpu.memory_space<vmem>>, %arg5: memref<1x128xf32, #tpu.memory_space<vmem>>, %arg6: memref<8x128xf32, #tpu.memory_space<vmem>>) attributes {dimension_semantics = [#tpu.dimension_semantics<parallel>], iteration_bounds = array<i64: 1>, scalar_prefetch = 0 : i64, scratch_operands = 0 : i64, tpu.core_type = #tpu.core_type<tc>, window_params = [{transform_indices = @transform_0, window_bounds = array<i64: 8, 128>}, {pipeline_mode = #tpu.pipeline_mode<synchronous>, transform_indices = @transform_1, window_bounds = array<i64: 128, 128>}, {pipeline_mode = #tpu.pipeline_mode<synchronous>, transform_indices = @transform_2, window_bounds = array<i64: 1, 128>}, {pipeline_mode = #tpu.pipeline_mode<synchronous>, transform_indices = @transform_3, window_bounds = array<i64: 128, 128>}, {pipeline_mode = #tpu.pipeline_mode<synchronous>, transform_indices = @transform_4, window_bounds = array<i64: 1, 128>}, {transform_indices = @transform_5, window_bounds = array<i64: 8, 128>}]} {
    %c0 = arith.constant 0 : index
    %c0_0 = arith.constant 0 : index
    %0 = vector.load %arg1[%c0, %c0_0] : memref<8x128xf32, #tpu.memory_space<vmem>>, vector<8x128xf32>
    %c0_1 = arith.constant 0 : index
    %c0_2 = arith.constant 0 : index
    %1 = vector.load %arg2[%c0_1, %c0_2] : memref<128x128xf32, #tpu.memory_space<vmem>>, vector<128x128xf32>
    %cst = arith.constant dense<0.000000e+00> : vector<8x128xf32>
    %2 = tpu.matmul %0, %1, %cst {dimension_numbers = #tpu.dot_dimension_numbers<[1], [0], [0], [1], [0, 0, 1, 1], [], []>} : vector<8x128xf32>, vector<128x128xf32>, vector<8x128xf32> -> vector<8x128xf32>
    %c0_3 = arith.constant 0 : index
    %c0_4 = arith.constant 0 : index
    %3 = vector.load %arg3[%c0_3, %c0_4] : memref<1x128xf32, #tpu.memory_space<vmem>>, vector<1x128xf32>
    %4 = vector.broadcast %3 : vector<1x128xf32> to vector<8x128xf32>
    %5 = arith.addf %2, %4 : vector<8x128xf32>
    %6 = math.tanh %5 : vector<8x128xf32>
    %c0_5 = arith.constant 0 : index
    %c0_6 = arith.constant 0 : index
    %7 = vector.load %arg4[%c0_5, %c0_6] : memref<128x128xf32, #tpu.memory_space<vmem>>, vector<128x128xf32>
    %cst_7 = arith.constant dense<0.000000e+00> : vector<8x128xf32>
    %8 = tpu.matmul %6, %7, %cst_7 {dimension_numbers = #tpu.dot_dimension_numbers<[1], [0], [0], [1], [0, 0, 1, 1], [], []>} : vector<8x128xf32>, vector<128x128xf32>, vector<8x128xf32> -> vector<8x128xf32>
    %c0_8 = arith.constant 0 : index
    %c0_9 = arith.constant 0 : index
    %9 = vector.load %arg5[%c0_8, %c0_9] : memref<1x128xf32, #tpu.memory_space<vmem>>, vector<1x128xf32>
    %10 = vector.broadcast %9 : vector<1x128xf32> to vector<8x128xf32>
    %11 = arith.addf %8, %10 : vector<8x128xf32>
    %c0_10 = arith.constant 0 : index
    %c0_11 = arith.constant 0 : index
    %12 = vector.load %arg6[%c0_10, %c0_11] : memref<8x128xf32, #tpu.memory_space<vmem>>, vector<8x128xf32>
    tpu.vector_store %arg6[%c0_10, %c0_11], %11 {strides = array<i32>} : memref<8x128xf32, #tpu.memory_space<vmem>>, vector<8x128xf32>,
    return
  }
  func.func @transform_0(%arg0: i32) -> (i32, i32) {
    %c0_i32 = arith.constant 0 : i32
    %c0_i32_0 = arith.constant 0 : i32
    return %arg0, %c0_i32 : i32, i32
  }
  func.func @transform_1(%arg0: i32) -> (i32, i32) {
    %c0_i32 = arith.constant 0 : i32
    %c0_i32_0 = arith.constant 0 : i32
    %c0_i32_1 = arith.constant 0 : i32
    return %c0_i32, %c0_i32_0 : i32, i32
  }
  func.func @transform_2(%arg0: i32) -> (i32, i32) {
    %c0_i32 = arith.constant 0 : i32
    %c0_i32_0 = arith.constant 0 : i32
    %c0_i32_1 = arith.constant 0 : i32
    return %c0_i32, %c0_i32_0 : i32, i32
  }
  func.func @transform_3(%arg0: i32) -> (i32, i32) {
    %c0_i32 = arith.constant 0 : i32
    %c0_i32_0 = arith.constant 0 : i32
    %c0_i32_1 = arith.constant 0 : i32
    return %c0_i32, %c0_i32_0 : i32, i32
  }
  func.func @transform_4(%arg0: i32) -> (i32, i32) {
    %c0_i32 = arith.constant 0 : i32
    %c0_i32_0 = arith.constant 0 : i32
    %c0_i32_1 = arith.constant 0 : i32
    return %c0_i32, %c0_i32_0 : i32, i32
  }
  func.func @transform_5(%arg0: i32) -> (i32, i32) {
    %c0_i32 = arith.constant 0 : i32
    %c0_i32_0 = arith.constant 0 : i32
    return %arg0, %c0_i32 : i32, i32
  }
}

module attributes {stable_mosaic.version = 11 : i64} {
  func.func @kernel(%arg0: i32, %arg1: memref<8x128xf32, #tpu.memory_space<vmem>>, %arg2: memref<128x128xf32, #tpu.memory_space<vmem>>, %arg3: memref<1x128xf32, #tpu.memory_space<vmem>>, %arg4: memref<128x128xf32, #tpu.memory_space<vmem>>, %arg5: memref<1x128xf32, #tpu.memory_space<vmem>>, %arg6: memref<8x128xf32, #tpu.memory_space<vmem>>) attributes {dimension_semantics = [#tpu.dimension_semantics<parallel>], iteration_bounds = array<i64: 1>, scalar_prefetch = 0 : i64, scratch_operands = 0 : i64, tpu.core_type = #tpu.core_type<tc>, window_params = [{transform_indices = @transform_0, window_bounds = array<i64: 8, 128>}, {pipeline_mode = #tpu.pipeline_mode<synchronous>, transform_indices = @transform_1, window_bounds = array<i64: 128, 128>}, {pipeline_mode = #tpu.pipeline_mode<synchronous>, transform_indices = @transform_2, window_bounds = array<i64: 1, 128>}, {pipeline_mode = #tpu.pipeline_mode<synchronous>, transform_indices = @transform_3, window_bounds = array<i64: 128, 128>}, {pipeline_mode = #tpu.pipeline_mode<synchronous>, transform_indices = @transform_4, window_bounds = array<i64: 1, 128>}, {transform_indices = @transform_5, window_bounds = array<i64: 8, 128>}]} {
    %c0 = arith.constant 0 : index
    %c0_0 = arith.constant 0 : index
    %0 = vector.load %arg1[%c0, %c0_0] : memref<8x128xf32, #tpu.memory_space<vmem>>, vector<8x128xf32>
    %c0_1 = arith.constant 0 : index
    %c0_2 = arith.constant 0 : index
    %1 = vector.load %arg2[%c0_1, %c0_2] : memref<128x128xf32, #tpu.memory_space<vmem>>, vector<128x128xf32>
    %cst = arith.constant dense<0.000000e+00> : vector<8x128xf32>
    %2 = tpu.matmul %0, %1, %cst {dimension_numbers = #tpu.dot_dimension_numbers<[1], [0], [0], [1], [0, 0, 1, 1], [], []>} : vector<8x128xf32>, vector<128x128xf32>, vector<8x128xf32> -> vector<8x128xf32>
    %c0_3 = arith.constant 0 : index
    %c0_4 = arith.constant 0 : index
    %3 = vector.load %arg3[%c0_3, %c0_4] : memref<1x128xf32, #tpu.memory_space<vmem>>, vector<1x128xf32>
    %4 = vector.broadcast %3 : vector<1x128xf32> to vector<8x128xf32>
    %5 = arith.addf %2, %4 : vector<8x128xf32>
    %6 = math.tanh %5 : vector<8x128xf32>
    %c0_5 = arith.constant 0 : index
    %c0_6 = arith.constant 0 : index
    %7 = vector.load %arg4[%c0_5, %c0_6] : memref<128x128xf32, #tpu.memory_space<vmem>>, vector<128x128xf32>
    %cst_7 = arith.constant dense<0.000000e+00> : vector<8x128xf32>
    %8 = tpu.matmul %6, %7, %cst_7 {dimension_numbers = #tpu.dot_dimension_numbers<[1], [0], [0], [1], [0, 0, 1, 1], [], []>} : vector<8x128xf32>, vector<128x128xf32>, vector<8x128xf32> -> vector<8x128xf32>
    %c0_8 = arith.constant 0 : index
    %c0_9 = arith.constant 0 : index
    %9 = vector.load %arg5[%c0_8, %c0_9] : memref<1x128xf32, #tpu.memory_space<vmem>>, vector<1x128xf32>
    %10 = vector.broadcast %9 : vector<1x128xf32> to vector<8x128xf32>
    %11 = arith.addf %8, %10 : vector<8x128xf32>
    %c0_10 = arith.constant 0 : index
    %c0_11 = arith.constant 0 : index
    %12 = vector.load %arg6[%c0_10, %c0_11] : memref<8x128xf32, #tpu.memory_space<vmem>>, vector<8x128xf32>
    tpu.vector_store %arg6[%c0_10, %c0_11], %11 {strides = array<i32>} : memref<8x128xf32, #tpu.memory_space<vmem>>, vector<8x128xf32>,
    return
  }
  func.func @transform_0(%arg0: i32) -> (i32, i32) {
    %c0_i32 = arith.constant 0 : i32
    %c0_i32_0 = arith.constant 0 : i32
    return %arg0, %c0_i32 : i32, i32
  }
  func.func @transform_1(%arg0: i32) -> (i32, i32) {
    %c0_i32 = arith.constant 0 : i32
    %c0_i32_0 = arith.constant 0 : i32
    %c0_i32_1 = arith.constant 0 : i32
    return %c0_i32, %c0_i32_0 : i32, i32
  }
  func.func @transform_2(%arg0: i32) -> (i32, i32) {
    %c0_i32 = arith.constant 0 : i32
    %c0_i32_0 = arith.constant 0 : i32
    %c0_i32_1 = arith.constant 0 : i32
    return %c0_i32, %c0_i32_0 : i32, i32
  }
  func.func @transform_3(%arg0: i32) -> (i32, i32) {
    %c0_i32 = arith.constant 0 : i32
    %c0_i32_0 = arith.constant 0 : i32
    %c0_i32_1 = arith.constant 0 : i32
    return %c0_i32, %c0_i32_0 : i32, i32
  }
  func.func @transform_4(%arg0: i32) -> (i32, i32) {
    %c0_i32 = arith.constant 0 : i32
    %c0_i32_0 = arith.constant 0 : i32
    %c0_i32_1 = arith.constant 0 : i32
    return %c0_i32, %c0_i32_0 : i32, i32
  }
  func.func @transform_5(%arg0: i32) -> (i32, i32) {
    %c0_i32 = arith.constant 0 : i32
    %c0_i32_0 = arith.constant 0 : i32
    return %arg0, %c0_i32 : i32, i32
  }
}

</mosaic_0001>

<bundles_post_ra>
// kernel: tpu_custom_call.1
= control target key start
LH: loop header
LB: loop body
LE: loop exit
PB: predicated region body
PF: predicated region fallthrough
CT: control target
= control target key end

     0   :  { %10 = vsyncpa [#allocation3], 0  ;;  %s333_s0 = inlined_call_operand.hbm [shape: f32[8,128], index: 0, kind: input, shape index: {}]   ;;  %s334_s1 = inlined_call_operand.hbm [shape: f32[128,128], index: 1, kind: input, shape index: {}]   ;;  %s335_s2 = inlined_call_operand.vmem [shape: f32[1,128], index: 2, kind: input, shape index: {}]   ;;  %s336_s3 = inlined_call_operand.hbm [shape: f32[128,128], index: 3, kind: input, shape index: {}]   ;;  %s337_s4 = inlined_call_operand.vmem [shape: f32[1,128], index: 4, kind: input, shape index: {}]   ;;  %s338_s5 = inlined_call_operand.hbm [shape: f32[8,128], index: 5, kind: output, shape index: {}]  }
   0x1   :  { %11 = vsyncpa [#allocation6], 0  ;;  %s28_s20 = sshll.u32 %s334_s1, 4  ;;  %s29_s20 = int_to_ptr.hbm [resolvable:$true] %s28_s20 }
   0x2   :  { %12 = vsyncpa [#allocation4], 0  ;;  %s279_s21 = smov [#allocation5]   ;;  %s18_s25 = sshll.u32 %s333_s0, 4  ;;  %s19_s25 = int_to_ptr.hbm [resolvable:$true] %s18_s25 }
   0x3   :  { %s30_s22 = sshll.u32 %s279_s21, 4  ;;  %s280_s26 = smov 128   ;;  %s31_s22 = int_to_ptr.vmem [resolvable:$true] %s30_s22 }
   0x4   :  { %s281_s27 = smov 8   ;;  %s282_s28 = smov [#allocation2]  }
   0x5   :  { %36 = dma.hbm_to_vmem [thread:$0]  %s29_s20, 2048, %s31_s22, [#allocation6], %s280_s26, %s280_s26, %s281_s27  }
   0x6   :  { %s20_s29 = sshll.u32 %s282_s28, 4  ;;  %s43_s7 = sshll.u32 %s336_s3, 4  ;;  %s21_s29 = int_to_ptr.vmem [resolvable:$true] %s20_s29  ;;  %s44_s7 = int_to_ptr.hbm [resolvable:$true] %s43_s7 }
   0x7   :  { %23 = dma.hbm_to_vmem [thread:$0]  %s19_s25, 128, %s21_s29, [#allocation3]  }
   0x8   :  { %s283_s1 = smov [#allocation7]  }
   0x9   :  { %s45_s8 = sshll.u32 %s283_s1, 4  ;;  %s46_s8 = int_to_ptr.vmem [resolvable:$true] %s45_s8 }
   0xa   :  { %51 = dma.hbm_to_vmem [thread:$0]  %s44_s7, 2048, %s46_s8, [#allocation6], %s280_s26, %s280_s26, %s281_s27  }
   0xb   :  { %273 = dma.done.wait [#allocation3], 128  }
   0xc   :  { %274 = vsyncadd [#allocation3], 4294967168 }
   0xd   :  { %275 = dma.done.wait [#allocation6], 4096  }
   0xe   :  { %276 = vsyncadd [#allocation6], 4294963200  ;;  %v82_v0 = vld [vmem:[#allocation5 + $0x78] sm:$0xff]  ;;  %v81_v1 = vld [vmem:[#allocation5 + $0x70] sm:$0xff]  ;;  %s284_s11 = smov [#allocation8]   ;;  %s156_s15 = sshll.u32 %s338_s5, 4  ;;  %s157_s15 = int_to_ptr.hbm [resolvable:$true] %s156_s15 }
   0xf   :  { %87 = vmatpush.msra.mxu0 %v82_v0  ;;  %v80_v2 = vld [vmem:[#allocation5 + $0x68] sm:$0xff]  ;;  %v79_v3 = vld [vmem:[#allocation5 + $0x60] sm:$0xff]  ;;  %v123_v4 = vld [vmem:[#allocation7 + $0x78] sm:$0xff]  ;;  %s154_s12 = sshll.u32 %s284_s11, 4  ;;  %s155_s12 = int_to_ptr.vmem [resolvable:$true] %s154_s12 }
  0x10   :  { %v78_v5 = vld [vmem:[#allocation5 + $0x58] sm:$0xff]  ;;  %128 = vmatpush.msra.mxu1 %v123_v4  ;;  %v122_v6 = vld [vmem:[#allocation7 + $0x70] sm:$0xff]  ;;  %v121_v7 = vld [vmem:[#allocation7 + $0x68] sm:$0xff] }
  0x11   :  { %88 = vmatpush.msra.mxu0 %v81_v1  ;;  %v77_v8 = vld [vmem:[#allocation5 + $0x50] sm:$0xff]  ;;  %v120_v9 = vld [vmem:[#allocation7 + $0x60] sm:$0xff]  ;;  %v76_v10 = vld [vmem:[#allocation5 + $0x48] sm:$0xff] }
  0x12   :  { %129 = vmatpush.msra.mxu1 %v122_v6  ;;  %v119_v11 = vld [vmem:[#allocation7 + $0x58] sm:$0xff]  ;;  %v75_v12 = vld [vmem:[#allocation5 + $0x40] sm:$0xff]  ;;  %v118_v13 = vld [vmem:[#allocation7 + $0x50] sm:$0xff] }
  0x13   :  { %89 = vmatpush.msra.mxu0 %v80_v2  ;;  %v74_v14 = vld [vmem:[#allocation5 + $0x38] sm:$0xff]  ;;  %v117_v15 = vld [vmem:[#allocation7 + $0x48] sm:$0xff]  ;;  %v73_v16 = vld [vmem:[#allocation5 + $0x30] sm:$0xff] }
  0x14   :  { %130 = vmatpush.msra.mxu1 %v121_v7  ;;  %v116_v17 = vld [vmem:[#allocation7 + $0x40] sm:$0xff]  ;;  %v72_v18 = vld [vmem:[#allocation5 + $0x28] sm:$0xff]  ;;  %v115_v19 = vld [vmem:[#allocation7 + $0x38] sm:$0xff] }
  0x15   :  { %90 = vmatpush.msra.mxu0 %v79_v3  ;;  %v71_v20 = vld [vmem:[#allocation5 + $0x20] sm:$0xff]  ;;  %v114_v21 = vld [vmem:[#allocation7 + $0x30] sm:$0xff]  ;;  %v70_v22 = vld [vmem:[#allocation5 + $0x18] sm:$0xff] }
  0x16   :  { %131 = vmatpush.msra.mxu1 %v120_v9  ;;  %v113_v23 = vld [vmem:[#allocation7 + $0x28] sm:$0xff]  ;;  %v69_v24 = vld [vmem:[#allocation5 + $0x10] sm:$0xff]  ;;  %v67_v26 = vld [vmem:[#allocation5] sm:$0xff] }
  0x17   :  { %91 = vmatpush.msra.mxu0 %v78_v5  ;;  %v68_v25 = vld [vmem:[#allocation5 + $0x8] sm:$0xff]  ;;  %v66_v27 = vld [vmem:[#allocation2] sm:$0xff]  ;;  %v112_v28 = vld [vmem:[#allocation7 + $0x20] sm:$0xff] }
  0x18   :  { %132 = vmatpush.msra.mxu1 %v119_v11  ;;  %v111_v29 = vld [vmem:[#allocation7 + $0x18] sm:$0xff]  ;;  %v110_v30 = vld [vmem:[#allocation7 + $0x10] sm:$0xff]  ;;  %v109_v31 = vld [vmem:[#allocation7 + $0x8] sm:$0xff] }
  0x19   :  { %92 = vmatpush.msra.mxu0 %v77_v8  ;;  %v108_v32 = vld [vmem:[#allocation7] sm:$0xff]  ;;  %v173_v33 = vld [vmem:[%s335_s2] ss:$0 sm:$0xff] }
  0x1a   :  { %133 = vmatpush.msra.mxu1 %v118_v13  ;;  %v174_v37 = vld [vmem:[%s337_s4] ss:$0 sm:$0xff] }
  0x1b   :  { %93 = vmatpush.msra.mxu0 %v76_v10 }
  0x1c   :  { %134 = vmatpush.msra.mxu1 %v117_v15 }
  0x1d   :  { %94 = vmatpush.msra.mxu0 %v75_v12 }
  0x1e   :  { %135 = vmatpush.msra.mxu1 %v116_v17 }
  0x1f   :  { %95 = vmatpush.msra.mxu0 %v74_v14 }
  0x20   :  { %136 = vmatpush.msra.mxu1 %v115_v19 }
  0x21   :  { %96 = vmatpush.msra.mxu0 %v73_v16 }
  0x22   :  { %137 = vmatpush.msra.mxu1 %v114_v21 }
  0x23   :  { %97 = vmatpush.msra.mxu0 %v72_v18 }
  0x24   :  { %138 = vmatpush.msra.mxu1 %v113_v23 }
  0x25   :  { %98 = vmatpush.msra.mxu0 %v71_v20 }
  0x26   :  { %139 = vmatpush.msra.mxu1 %v112_v28 }
  0x27   :  { %99 = vmatpush.msra.mxu0 %v70_v22 }
  0x28   :  { %140 = vmatpush.msra.mxu1 %v111_v29 }
  0x29   :  { %100 = vmatpush.msra.mxu0 %v69_v24 }
  0x2a   :  { %141 = vmatpush.msra.mxu1 %v110_v30 }
  0x2b   :  { %101 = vmatpush.msra.mxu0 %v68_v25 }
  0x2c   :  { %142 = vmatpush.msra.mxu1 %v109_v31 }
  0x2d   :  { %102 = vmatpush.msra.mxu0 %v67_v26 }
  0x2e   :  { %103 = vmatmul.f32.vlgmr.msra.gmra.mxu0 %v66_v27  ;;  %143 = vmatpush.msra.mxu1 %v108_v32 }
  0xab   :  { %v104_v34 = vpop.f32.mrf.mxu0 }
  0xac   :  { %v105_v35 = vadd.f32 %v173_v33, %v104_v34 }
  0xae   :  { %175 = vtanh.f32 %v105_v35 }
  0xb4   :  { %v176_v36 = vpop.eup %175 }
  0xb5   :  { %144 = vmatmul.f32.vlgmr.msra.gmra.mxu1 %v176_v36 }
 0x132   :  { %v145_v38 = vpop.f32.mrf.mxu1 }
 0x133   :  { %v146_v39 = vadd.f32 %v174_v37, %v145_v38 }
 0x135   :  { %148 = vst [vmem:[#allocation8] sm:$0xff] %v146_v39 }
 0x136   :  { %159 = dma.vmem_to_hbm [thread:$0]  %s155_s12, 128, %s157_s15, [#allocation4]  }
 0x137   :  { %277 = dma.done.wait [#allocation4], 128  }
 0x138   :  { %278 = vsyncadd [#allocation4], 4294967168 }
 0x139   :  { %164 = vsyncpa [#allocation3], 1 }
 0x13a   :  { %165 = vsyncpa [#allocation6], 1 }
 0x13b   :  { %166 = vsyncpa [#allocation4], 1 }

// kernel: tpu_custom_call.1
= control target key start
LH: loop header
LB: loop body
LE: loop exit
PB: predicated region body
PF: predicated region fallthrough
CT: control target
= control target key end

     0   :  { %10 = vsyncpa [#allocation3], 0  ;;  %s333_s0 = inlined_call_operand.hbm [shape: f32[8,128], index: 0, kind: input, shape index: {}]   ;;  %s334_s1 = inlined_call_operand.hbm [shape: f32[128,128], index: 1, kind: input, shape index: {}]   ;;  %s335_s2 = inlined_call_operand.vmem [shape: f32[1,128], index: 2, kind: input, shape index: {}]   ;;  %s336_s3 = inlined_call_operand.hbm [shape: f32[128,128], index: 3, kind: input, shape index: {}]   ;;  %s337_s4 = inlined_call_operand.vmem [shape: f32[1,128], index: 4, kind: input, shape index: {}]   ;;  %s338_s5 = inlined_call_operand.hbm [shape: f32[8,128], index: 5, kind: output, shape index: {}]  }
   0x1   :  { %11 = vsyncpa [#allocation6], 0  ;;  %s28_s20 = sshll.u32 %s334_s1, 4  ;;  %s29_s20 = int_to_ptr.hbm [resolvable:$true] %s28_s20 }
   0x2   :  { %12 = vsyncpa [#allocation4], 0  ;;  %s279_s21 = smov [#allocation5]   ;;  %s18_s25 = sshll.u32 %s333_s0, 4  ;;  %s19_s25 = int_to_ptr.hbm [resolvable:$true] %s18_s25 }
   0x3   :  { %s30_s22 = sshll.u32 %s279_s21, 4  ;;  %s280_s26 = smov 128   ;;  %s31_s22 = int_to_ptr.vmem [resolvable:$true] %s30_s22 }
   0x4   :  { %s281_s27 = smov 8   ;;  %s282_s28 = smov [#allocation2]  }
   0x5   :  { %36 = dma.hbm_to_vmem [thread:$0]  %s29_s20, 2048, %s31_s22, [#allocation6], %s280_s26, %s280_s26, %s281_s27  }
   0x6   :  { %s20_s29 = sshll.u32 %s282_s28, 4  ;;  %s43_s7 = sshll.u32 %s336_s3, 4  ;;  %s21_s29 = int_to_ptr.vmem [resolvable:$true] %s20_s29  ;;  %s44_s7 = int_to_ptr.hbm [resolvable:$true] %s43_s7 }
   0x7   :  { %23 = dma.hbm_to_vmem [thread:$0]  %s19_s25, 128, %s21_s29, [#allocation3]  }
   0x8   :  { %s283_s1 = smov [#allocation7]  }
   0x9   :  { %s45_s8 = sshll.u32 %s283_s1, 4  ;;  %s46_s8 = int_to_ptr.vmem [resolvable:$true] %s45_s8 }
   0xa   :  { %51 = dma.hbm_to_vmem [thread:$0]  %s44_s7, 2048, %s46_s8, [#allocation6], %s280_s26, %s280_s26, %s281_s27  }
   0xb   :  { %273 = dma.done.wait [#allocation3], 128  }
   0xc   :  { %274 = vsyncadd [#allocation3], 4294967168 }
   0xd   :  { %275 = dma.done.wait [#allocation6], 4096  }
   0xe   :  { %276 = vsyncadd [#allocation6], 4294963200  ;;  %v82_v0 = vld [vmem:[#allocation5 + $0x78] sm:$0xff]  ;;  %v81_v1 = vld [vmem:[#allocation5 + $0x70] sm:$0xff]  ;;  %s284_s11 = smov [#allocation8]   ;;  %s156_s15 = sshll.u32 %s338_s5, 4  ;;  %s157_s15 = int_to_ptr.hbm [resolvable:$true] %s156_s15 }
   0xf   :  { %87 = vmatpush.msra.mxu0 %v82_v0  ;;  %v80_v2 = vld [vmem:[#allocation5 + $0x68] sm:$0xff]  ;;  %v79_v3 = vld [vmem:[#allocation5 + $0x60] sm:$0xff]  ;;  %v123_v4 = vld [vmem:[#allocation7 + $0x78] sm:$0xff]  ;;  %s154_s12 = sshll.u32 %s284_s11, 4  ;;  %s155_s12 = int_to_ptr.vmem [resolvable:$true] %s154_s12 }
  0x10   :  { %v78_v5 = vld [vmem:[#allocation5 + $0x58] sm:$0xff]  ;;  %128 = vmatpush.msra.mxu1 %v123_v4  ;;  %v122_v6 = vld [vmem:[#allocation7 + $0x70] sm:$0xff]  ;;  %v121_v7 = vld [vmem:[#allocation7 + $0x68] sm:$0xff] }
  0x11   :  { %88 = vmatpush.msra.mxu0 %v81_v1  ;;  %v77_v8 = vld [vmem:[#allocation5 + $0x50] sm:$0xff]  ;;  %v120_v9 = vld [vmem:[#allocation7 + $0x60] sm:$0xff]  ;;  %v76_v10 = vld [vmem:[#allocation5 + $0x48] sm:$0xff] }
  0x12   :  { %129 = vmatpush.msra.mxu1 %v122_v6  ;;  %v119_v11 = vld [vmem:[#allocation7 + $0x58] sm:$0xff]  ;;  %v75_v12 = vld [vmem:[#allocation5 + $0x40] sm:$0xff]  ;;  %v118_v13 = vld [vmem:[#allocation7 + $0x50] sm:$0xff] }
  0x13   :  { %89 = vmatpush.msra.mxu0 %v80_v2  ;;  %v74_v14 = vld [vmem:[#allocation5 + $0x38] sm:$0xff]  ;;  %v117_v15 = vld [vmem:[#allocation7 + $0x48] sm:$0xff]  ;;  %v73_v16 = vld [vmem:[#allocation5 + $0x30] sm:$0xff] }
  0x14   :  { %130 = vmatpush.msra.mxu1 %v121_v7  ;;  %v116_v17 = vld [vmem:[#allocation7 + $0x40] sm:$0xff]  ;;  %v72_v18 = vld [vmem:[#allocation5 + $0x28] sm:$0xff]  ;;  %v115_v19 = vld [vmem:[#allocation7 + $0x38] sm:$0xff] }
  0x15   :  { %90 = vmatpush.msra.mxu0 %v79_v3  ;;  %v71_v20 = vld [vmem:[#allocation5 + $0x20] sm:$0xff]  ;;  %v114_v21 = vld [vmem:[#allocation7 + $0x30] sm:$0xff]  ;;  %v70_v22 = vld [vmem:[#allocation5 + $0x18] sm:$0xff] }
  0x16   :  { %131 = vmatpush.msra.mxu1 %v120_v9  ;;  %v113_v23 = vld [vmem:[#allocation7 + $0x28] sm:$0xff]  ;;  %v69_v24 = vld [vmem:[#allocation5 + $0x10] sm:$0xff]  ;;  %v67_v26 = vld [vmem:[#allocation5] sm:$0xff] }
  0x17   :  { %91 = vmatpush.msra.mxu0 %v78_v5  ;;  %v68_v25 = vld [vmem:[#allocation5 + $0x8] sm:$0xff]  ;;  %v66_v27 = vld [vmem:[#allocation2] sm:$0xff]  ;;  %v112_v28 = vld [vmem:[#allocation7 + $0x20] sm:$0xff] }
  0x18   :  { %132 = vmatpush.msra.mxu1 %v119_v11  ;;  %v111_v29 = vld [vmem:[#allocation7 + $0x18] sm:$0xff]  ;;  %v110_v30 = vld [vmem:[#allocation7 + $0x10] sm:$0xff]  ;;  %v109_v31 = vld [vmem:[#allocation7 + $0x8] sm:$0xff] }
  0x19   :  { %92 = vmatpush.msra.mxu0 %v77_v8  ;;  %v108_v32 = vld [vmem:[#allocation7] sm:$0xff]  ;;  %v173_v33 = vld [vmem:[%s335_s2] ss:$0 sm:$0xff] }
  0x1a   :  { %133 = vmatpush.msra.mxu1 %v118_v13  ;;  %v174_v37 = vld [vmem:[%s337_s4] ss:$0 sm:$0xff] }
  0x1b   :  { %93 = vmatpush.msra.mxu0 %v76_v10 }
  0x1c   :  { %134 = vmatpush.msra.mxu1 %v117_v15 }
  0x1d   :  { %94 = vmatpush.msra.mxu0 %v75_v12 }
  0x1e   :  { %135 = vmatpush.msra.mxu1 %v116_v17 }
  0x1f   :  { %95 = vmatpush.msra.mxu0 %v74_v14 }
  0x20   :  { %136 = vmatpush.msra.mxu1 %v115_v19 }
  0x21   :  { %96 = vmatpush.msra.mxu0 %v73_v16 }
  0x22   :  { %137 = vmatpush.msra.mxu1 %v114_v21 }
  0x23   :  { %97 = vmatpush.msra.mxu0 %v72_v18 }
  0x24   :  { %138 = vmatpush.msra.mxu1 %v113_v23 }
  0x25   :  { %98 = vmatpush.msra.mxu0 %v71_v20 }
  0x26   :  { %139 = vmatpush.msra.mxu1 %v112_v28 }
  0x27   :  { %99 = vmatpush.msra.mxu0 %v70_v22 }
  0x28   :  { %140 = vmatpush.msra.mxu1 %v111_v29 }
  0x29   :  { %100 = vmatpush.msra.mxu0 %v69_v24 }
  0x2a   :  { %141 = vmatpush.msra.mxu1 %v110_v30 }
  0x2b   :  { %101 = vmatpush.msra.mxu0 %v68_v25 }
  0x2c   :  { %142 = vmatpush.msra.mxu1 %v109_v31 }
  0x2d   :  { %102 = vmatpush.msra.mxu0 %v67_v26 }
  0x2e   :  { %103 = vmatmul.f32.vlgmr.msra.gmra.mxu0 %v66_v27  ;;  %143 = vmatpush.msra.mxu1 %v108_v32 }
  0xab   :  { %v104_v34 = vpop.f32.mrf.mxu0 }
  0xac   :  { %v105_v35 = vadd.f32 %v173_v33, %v104_v34 }
  0xae   :  { %175 = vtanh.f32 %v105_v35 }
  0xb4   :  { %v176_v36 = vpop.eup %175 }
  0xb5   :  { %144 = vmatmul.f32.vlgmr.msra.gmra.mxu1 %v176_v36 }
 0x132   :  { %v145_v38 = vpop.f32.mrf.mxu1 }
 0x133   :  { %v146_v39 = vadd.f32 %v174_v37, %v145_v38 }
 0x135   :  { %148 = vst [vmem:[#allocation8] sm:$0xff] %v146_v39 }
 0x136   :  { %159 = dma.vmem_to_hbm [thread:$0]  %s155_s12, 128, %s157_s15, [#allocation4]  }
 0x137   :  { %277 = dma.done.wait [#allocation4], 128  }
 0x138   :  { %278 = vsyncadd [#allocation4], 4294967168 }
 0x139   :  { %164 = vsyncpa [#allocation3], 1 }
 0x13a   :  { %165 = vsyncpa [#allocation6], 1 }
 0x13b   :  { %166 = vsyncpa [#allocation4], 1 }

</bundles_post_ra>
